<compile_context>
chip_gen: v5e
topology: v5e:2x2
jax: 0.10.0
libtpu: 0.0.40
codegen_flags: <defaults>
</compile_context>

<pallas_src>
import math

import jax
import jax.numpy as jnp
from jax.experimental import pallas as pl
from jax.experimental.pallas import tpu as pltpu

_MIB = 1024 * 1024


def _round_up(x, m):
    return ((x + m - 1) // m) * m


def _round_down(x, m):
    return (x // m) * m


def _sublane(dtype):
    # Sub-32-bit dtypes pack along sublanes: bf16 tiles want multiples of 16 rows,
    # int8/fp8 want 32.  f32 wants 8.
    return {1: 32, 2: 16}.get(jnp.dtype(dtype).itemsize, 8)


def _vmem_capacity_bytes():
    """Physical VMEM per TensorCore; conservative fallback if the query fails."""
    try:
        info = pltpu.get_tpu_info()
        cap = int(getattr(info, "vmem_capacity_bytes", 0) or 0)
        if cap > 0:
            return cap
    except Exception:
        pass
    return 64 * _MIB  # v7x per-core size; safe lower bound on every generation


def _linear_kernel(x_ref, w_ref, b_ref, o_ref):
    # x_ref: (TB, S)  w_ref: (S, D)  b_ref: (1, D)  o_ref: (TB, D)
    acc = jnp.dot(x_ref[...], w_ref[...], preferred_element_type=jnp.float32)
    o_ref[...] = (acc + b_ref[...].astype(jnp.float32)).astype(o_ref.dtype)


def reduction_dimension_forward(x, w, b, *, max_tile_rows=None):
    """out = x @ w + b on the MXU inside a Pallas kernel.

    x: (B, S)
    w: (S, D)   (transposed PyTorch Linear weight, i.e. W_pt.T)
    b: (D,)
    """
    B, S = x.shape
    S2, D = w.shape
    assert S == S2, (S, S2)
    assert b.shape == (D,), b.shape
    out_dtype = x.dtype

    x_item = jnp.dtype(x.dtype).itemsize
    w_item = jnp.dtype(w.dtype).itemsize
    o_item = jnp.dtype(out_dtype).itemsize
    sub = max(_sublane(x.dtype), _sublane(out_dtype))

    # ---- generation-aware VMEM budget -------------------------------------
    cap = _vmem_capacity_bytes()
    # Working set: ~44 MiB on v7x (64 MiB/TC), 64 MiB on v5e/v6e (128 MiB).
    ws_budget = max(8 * _MIB, min(64 * _MIB, cap - 20 * _MIB, int(cap * 0.7)))
    # Scoped VMEM limit: working set + headroom, below physical capacity.
    vmem_limit = max(ws_budget + 4 * _MIB, min(cap - 8 * _MIB, ws_budget + 16 * _MIB))

    # ---- row tile: grow to fill the budget ---------------------------------
    # Streamed bytes per batch row (x tile in + out tile out), double-buffered.
    per_row = 2 * (S * x_item + D * o_item)
    # W + bias are grid-invariant but Pallas still double-buffers them by default.
    resident = 2 * (S * D + D) * w_item
    budget_rows = max(sub, _round_down(max(0, ws_budget - resident) // per_row, sub))

    if B <= sub:
        # Single block equal to the full (tiny) batch: always a legal block shape.
        eff_tile = B
    else:
        eff_tile = budget_rows
        if max_tile_rows is not None:
            eff_tile = min(eff_tile, _round_up(max_tile_rows, sub))
        # Keep >=4 grid steps so the batch axis actually splits across both v7x
        # TensorCores and the DMA pipeline has iterations to overlap.
        eff_tile = min(eff_tile, _round_up(pl.cdiv(B, 4), sub))
        eff_tile = max(sub, min(eff_tile, _round_up(B, sub)))

    grid = (pl.cdiv(B, eff_tile),)
    b2 = b.reshape(1, D)

    cost = pl.CostEstimate(
        flops=2 * B * S * D,
        transcendentals=0,
        bytes_accessed=B * S * x_item + (S * D + D) * w_item + B * D * o_item,
    )

    return pl.pallas_call(
        _linear_kernel,
        out_shape=jax.ShapeDtypeStruct((B, D), out_dtype),
        grid_spec=pltpu.PrefetchScalarGridSpec(
            num_scalar_prefetch=0,
            grid=grid,
            in_specs=[
                # Streamed row tile of activations (double-buffered by Pallas;
                # ragged last block is masked automatically).
                pl.BlockSpec((eff_tile, S), lambda i: (i, 0)),
                # Weight + bias: constant index_map -> fetched once, VMEM-resident.
                pl.BlockSpec((S, D), lambda i: (0, 0)),
                pl.BlockSpec((1, D), lambda i: (0, 0)),
            ],
            out_specs=pl.BlockSpec((eff_tile, D), lambda i: (i, 0)),
        ),
        compiler_params=pltpu.CompilerParams(
            dimension_semantics=("parallel",),  # megacore-shardable batch axis
            vmem_limit_bytes=int(vmem_limit),
        ),
        cost_estimate=cost,
    )(x, w, b2)


def init_linear_params(key, statistic_nums, d_model):
    """Deterministic init mimicking PyTorch nn.Linear (uniform +-1/sqrt(fan_in))."""
    kw, kb = jax.random.split(key)
    bound = 1.0 / math.sqrt(statistic_nums)
    # Stored as (statistic_nums, d_model) == W_pt.T
    w = jax.random.uniform(kw, (statistic_nums, d_model), jnp.float32, -bound, bound)
    b = jax.random.uniform(kb, (d_model,), jnp.float32, -bound, bound)
    return w, b


if __name__ == "__main__":
    key = jax.random.PRNGKey(0)
    k_x, k_p = jax.random.split(key)

    # Small shapes; batch deliberately not a multiple of 8 and d_model not a
    # multiple of 128 to exercise the ragged last block + unaligned-D paths.
    batch = 20
    statistic_nums = 32
    d_model = 96

    x = jax.random.normal(k_x, (batch, statistic_nums), jnp.float32)
    w, b = init_linear_params(k_p, statistic_nums, d_model)

    ref = x @ w + b[None, :]

    # Auto-tiled path (tile derived from the generation's VMEM budget, capped to
    # give a multi-step grid).
    out = jax.block_until_ready(reduction_dimension_forward(x, w, b))
    assert out.shape == (batch, d_model), out.shape
    assert jnp.allclose(out, ref, atol=1e-5, rtol=1e-5)

    # Explicit small-tile override: 3-step grid with a masked ragged last block.
    out2 = jax.block_until_ready(
        reduction_dimension_forward(x, w, b, max_tile_rows=8)
    )
    assert jnp.allclose(out2, ref, atol=1e-5, rtol=1e-5)

    print("KERNEL_OK")
</pallas_src>

<mosaic_0001>
module attributes {stable_mosaic.version = 11 : i64} {
  func.func @_linear_kernel(%arg0: i32, %arg1: memref<8x32xf32, #tpu.memory_space<vmem>>, %arg2: memref<32x96xf32, #tpu.memory_space<vmem>>, %arg3: memref<1x96xf32, #tpu.memory_space<vmem>>, %arg4: memref<8x96xf32, #tpu.memory_space<vmem>>) attributes {dimension_semantics = [#tpu.dimension_semantics<parallel>], iteration_bounds = array<i64: 3>, scalar_prefetch = 0 : i64, scratch_operands = 0 : i64, tpu.core_type = #tpu.core_type<tc>, window_params = [{transform_indices = @transform_0, window_bounds = array<i64: 8, 32>}, {pipeline_mode = #tpu.pipeline_mode<synchronous>, transform_indices = @transform_1, window_bounds = array<i64: 32, 96>}, {pipeline_mode = #tpu.pipeline_mode<synchronous>, transform_indices = @transform_2, window_bounds = array<i64: 1, 96>}, {transform_indices = @transform_3, window_bounds = array<i64: 8, 96>}]} {
    %c0 = arith.constant 0 : index
    %c0_0 = arith.constant 0 : index
    %0 = vector.load %arg1[%c0, %c0_0] : memref<8x32xf32, #tpu.memory_space<vmem>>, vector<8x32xf32>
    %c0_1 = arith.constant 0 : index
    %c0_2 = arith.constant 0 : index
    %1 = vector.load %arg2[%c0_1, %c0_2] : memref<32x96xf32, #tpu.memory_space<vmem>>, vector<32x96xf32>
    %cst = arith.constant dense<0.000000e+00> : vector<8x96xf32>
    %2 = tpu.matmul %0, %1, %cst {dimension_numbers = #tpu.dot_dimension_numbers<[1], [0], [0], [1], [0, 0, 1, 1], [], []>} : vector<8x32xf32>, vector<32x96xf32>, vector<8x96xf32> -> vector<8x96xf32>
    %c0_3 = arith.constant 0 : index
    %c0_4 = arith.constant 0 : index
    %3 = vector.load %arg3[%c0_3, %c0_4] : memref<1x96xf32, #tpu.memory_space<vmem>>, vector<1x96xf32>
    %4 = vector.broadcast %3 : vector<1x96xf32> to vector<8x96xf32>
    %5 = arith.addf %2, %4 : vector<8x96xf32>
    %c0_5 = arith.constant 0 : index
    %c0_6 = arith.constant 0 : index
    %6 = vector.load %arg4[%c0_5, %c0_6] : memref<8x96xf32, #tpu.memory_space<vmem>>, vector<8x96xf32>
    tpu.vector_store %arg4[%c0_5, %c0_6], %5 {strides = array<i32>} : memref<8x96xf32, #tpu.memory_space<vmem>>, vector<8x96xf32>,
    return
  }
  func.func @transform_0(%arg0: i32) -> (i32, i32) {
    %c0_i32 = arith.constant 0 : i32
    %c0_i32_0 = arith.constant 0 : i32
    return %arg0, %c0_i32 : i32, i32
  }
  func.func @transform_1(%arg0: i32) -> (i32, i32) {
    %c0_i32 = arith.constant 0 : i32
    %c0_i32_0 = arith.constant 0 : i32
    %c0_i32_1 = arith.constant 0 : i32
    return %c0_i32, %c0_i32_0 : i32, i32
  }
  func.func @transform_2(%arg0: i32) -> (i32, i32) {
    %c0_i32 = arith.constant 0 : i32
    %c0_i32_0 = arith.constant 0 : i32
    %c0_i32_1 = arith.constant 0 : i32
    return %c0_i32, %c0_i32_0 : i32, i32
  }
  func.func @transform_3(%arg0: i32) -> (i32, i32) {
    %c0_i32 = arith.constant 0 : i32
    %c0_i32_0 = arith.constant 0 : i32
    return %arg0, %c0_i32 : i32, i32
  }
}

</mosaic_0001>

<bundles_post_ra>
// kernel: tpu_custom_call.1
= control target key start
LH: loop header
LB: loop body
LE: loop exit
PB: predicated region body
PF: predicated region fallthrough
CT: control target
= control target key end

     0   :  { %8 = vsyncpa [#allocation3], 0  ;;  %s703_s0 = inlined_call_operand.hbm [shape: f32[20,32], index: 0, kind: input, shape index: {}]   ;;  %s704_s1 = inlined_call_operand.hbm [shape: f32[32,96], index: 1, kind: input, shape index: {}]   ;;  %s705_s2 = inlined_call_operand.vmem [shape: f32[1,96], index: 2, kind: input, shape index: {}]   ;;  %s706_s3 = inlined_call_operand.hbm [shape: f32[20,96], index: 3, kind: output, shape index: {}]  }
   0x1   :  { %10 = vsyncpa [#allocation3 + $0x1], 0 }
   0x2   :  { %11 = vsyncpa [#allocation6], 0 }
   0x3   :  { %12 = vsyncpa [#allocation4], 0 }
   0x4   :  { %14 = vsyncpa [#allocation4 + $0x1], 0  ;;  %s566_s12 = smov 0   ;;  %s568_s13 = smov 0  }
   0x5   :  { %s570_s14 = smov 0   ;;  %s572_s15 = smov 0  }
   0x6 LB: > { %s130_s18 = sshll.u32 %s704_s1, 4  ;;  %s590_s19 = sadd.s32 4294967295, %s541_s15   ;;  %s541_s15 = sphi %s572_s15, %s715_s15   ;;  %s537_s14 = sphi %s570_s14, %s714_s14   ;;  %s533_s13 = sphi %s568_s13, %s713_s13   ;;  %s529_s12 = sphi %s566_s12, %s712_s12   ;;  %s131_s18 = int_to_ptr.hbm [resolvable:$true] %s130_s18 }
   0x7   : > { %p337_p0 = scmp.ge.s32.totalorder %s541_s15, 1  ;;  %p41_p1 = scmp.eq.s32.totalorder %s590_s19, 0 }
   0x8   : > { %p119_p2 = scmp.lt.s32.totalorder %s541_s15, 4  ;;  %s543_s21 = smov [#allocation5]  }
   0x9   : > { %s132_s22 = sshll.u32 %s543_s21, 4  ;;  %s544_s23 = smov 128   ;;  %s133_s22 = int_to_ptr.vmem [resolvable:$true] %s132_s22 }
   0xa   : > { %p595_p3 = pnand %p337_p0, %p119_p2  ;;  %s545_s24 = smov 8  }
   0xb   : > { %s336_s25 = sadd.s32 4294967294, %s541_s15   ;;  %s605_s26 = sadd.s32 1, %s541_s15  }
   0xc   : > { %p359_p4 = pneg %p595_p3  ;;  %s27_s27 = sadd.s32 1, %s537_s14 }
   0xd   : > { %s24_s28 = ssub.s32 %s541_s15, %s605_s26  ;;  %p34_p6 = scmp.ne.s32.totalorder %s537_s14, %s533_s13 }
   0xe   : > { %p360_p5 = pnand %p359_p4, %p41_p1  ;;  %p25_p7 = scmp.eq.s32.totalorder %s24_s28, 0 }
   0xf   : > { %p35_p8 = scmp.eq.s32.totalorder %s541_s15, 0  ;;  %p40_p9 = scmp.ne.s32.totalorder %s533_s13, %s529_s12 }
  0x10   : > { %362 = dma.hbm_to_vmem [thread:$0]  (!%p360_p5), %s131_s18, 512, %s133_s22, [#allocation6], %s544_s23, %s544_s23, %s545_s24  }
  0x11   : > { %p106_p10 = scmp.eq.s32.totalorder %s590_s19, 2  ;;  %p621_p11 = por %p41_p1, %p40_p9 }
  0x12   : > { %s617_s29 = scalar_select %p25_p7, %s537_s14, %s27_s27  }
  0x13   : > { %p625_p12 = por %p106_p10, %p34_p6  ;;  %p112_p13 = scmp.eq.s32.totalorder %s336_s25, 2 }
  0x14   : > { %p36_p0 = por %p35_p8, %p34_p6  ;;  %s149_s5 = sand.u32 1, %s537_s14  }
  0x15   : > { %p630_p2 = por %p112_p13, %p40_p9  ;;  %p372_p4 = scmp.lt.s32.totalorder %s541_s15, 3 }
  0x16   : > { %s340_s7 = sshll.u32 %s149_s5, 3  ;;  %s341_s8 = sshll.u32 %s541_s15, 3 }
  0x17   : > { %s157_s11 = scalar_lea.hbm %s703_s0, %s341_s8  ;;  %s153_s17 = scalar_lea.vmem [#allocation2], %s340_s7 }
  0x18   : > { %s159_s16 = sshll.u32 %s157_s11, 4  ;;  %s161_s18 = sshll.u32 %s153_s17, 4  ;;  %s160_s16 = int_to_ptr.hbm [resolvable:$true] %s159_s16  ;;  %s162_s18 = int_to_ptr.vmem [resolvable:$true] %s161_s18 }
  0x19   : > { %p639_p5 = pnand %p372_p4, %p36_p0  ;;  %s150_s22 = scalar_lea.sflag [#allocation3], %s149_s5 }
  0x1a   : > { %s441_s23 = sshra.s32 %s160_s16, 4  ;;  %s448_s28 = scalar_lea.hbm %s703_s0, 24  ;;  %s442_s23 = int_to_ptr.hbm [resolvable:$true] %s441_s23 }
  0x1b   : > { %s443_s24 = scalar_lea.hbm %s442_s23, 8  ;;  %p445_p7 = pneg %p639_p5 }
  0x1c   : > { %p444_p6 = scmp.ne.s32.totalorder %s442_s23, %s443_s24  ;;  %p449_p10 = scmp.lt.s32.totalorder %s442_s23, %s703_s0 }
  0x1d   : > { %p450_p13 = scmp.lt.s32.totalorder %s448_s28, %s443_s24 }
  0x1e   : > { %p446_p8 = pnand %p445_p7, %p444_p6 }
  0x1f   : > { %p451_p0 = por %p450_p13, %p449_p10 }
  0x20   : > { %p447_p9 = pneg %p446_p8 }
  0x22   : > { %p452_p4 = pnand %p451_p0, %p447_p9 }
  0x24   : > { %455 = shalt.err (!%p452_p4)
}
  0x25   : > { %366 = dma.hbm_to_vmem [thread:$0]  (!%p639_p5), %s160_s16, 128, %s162_s18, %s150_s22  }
  0x26   : > { %170 = sbr.rel (%p595_p3) target bundleno = 185 (0xb9), region = 32  ;;  %s656_s5 = sand.u32 (!%p595_p3), 1, %s533_s13  }
  0x27   : > { %s343_s9 = sshll.u32 (!%p595_p3), %s656_s5, 3  ;;  %s173_s10 = scalar_lea.sflag (!%p595_p3), [#allocation3], %s656_s5 }
  0x28   : > { %s176_s11 = scalar_lea.vmem (!%p595_p3), [#allocation2], %s343_s9 }
  0x2b   : > { %516 = dma.done.wait (%p621_p11), %s173_s10, 128  }
  0x2c   : > { %518 = vsyncadd (%p621_p11), %s173_s10, 4294967168 }
  0x2d   : > { %520 = dma.done.wait (%p41_p1), [#allocation6], 512  }
  0x2e   : > { %522 = vsyncadd (%p41_p1), [#allocation6], 4294966784  ;;  %v209_v0 = vld [vmem:[#allocation5 + $0x18] sm:$0xff]  ;;  %v208_v1 = vld [vmem:[#allocation5 + $0x10] sm:$0xff]  ;;  %vm214_vm0 = vcmask 261120   ;;  %s348_s20 = sshll.u32 %s590_s19, 3 }
  0x2f   : > { %230 = vmatpush.msra.mxu0 %v209_v0  ;;  %v207_v2 = vld [vmem:[#allocation5 + $0x8] sm:$0xff]  ;;  %v206_v3 = vld [vmem:[#allocation5] sm:$0xff]  ;;  %v205_v4 = vld [vmem:[%s176_s11] sm:$0xff]  ;;  %s251_s17 = scalar_lea.hbm %s706_s3, %s348_s20  ;;  %s204_s22 = scalar_lea.vmem [#allocation7], %s343_s9  ;;  %vm238_vm1 = vcmask 785408  }
  0x30   : > { %v410_v5 = vld [vmem:[%s705_s2] ss:$0 sm:$0xff]  ;;  %s253_s23 = sshll.u32 %s204_s22, 4  ;;  %s255_s24 = sshll.u32 %s251_s17, 4  ;;  %s254_s23 = int_to_ptr.vmem [resolvable:$true] %s253_s23  ;;  %s256_s24 = int_to_ptr.hbm [resolvable:$true] %s255_s24 }
  0x31   : > { %231 = vmatpush.msra.mxu0 %v208_v1  ;;  %s241_s25 = scalar_lea.sflag [#allocation4], %s656_s5  ;;  %s485_s19 = sshra.s32 %s256_s24, 4  ;;  %s486_s19 = int_to_ptr.hbm [resolvable:$true] %s485_s19 }
  0x32   : > { %s487_s27 = scalar_lea.hbm %s486_s19, 8  ;;  %s491_s8 = scalar_lea.hbm %s706_s3, 24 }
  0x33   : > { %232 = vmatpush.msra.mxu0 %v207_v2  ;;  %p488_p1 = scmp.ne.s32.totalorder %s486_s19, %s487_s27  ;;  %p492_p5 = scmp.lt.s32.totalorder %s486_s19, %s706_s3 }
  0x34   : > { %p493_p6 = scmp.lt.s32.totalorder %s491_s8, %s487_s27 }
  0x35   : > { %233 = vmatpush.msra.mxu0 %v206_v3  ;;  %p489_p3 = pnand %p488_p1, %p625_p12 }
  0x36   : > { %346 = vmatmul.msk.f32.vlgmr.msra.gmra.mxu0 %vm214_vm0, %v205_v4  ;;  %p494_p7 = por %p493_p6, %p492_p5 }
  0x37   : > { %p490_p11 = pneg %p489_p3 }
  0x39   : > { %p495_p8 = pnand %p494_p7, %p490_p11 }
  0xb3   : > { %v235_v6 = vpop.f32.mrf.mxu0 }
  0xb4   : > { %v236_v7 = vadd.f32 %v410_v5, %v235_v6 }
  0xb6   : > { %239 = vst.msk [vmem:[%s204_s22] sm:$0xff] %vm238_vm1, %v236_v7 }
  0xb7   : > { %498 = shalt.err (!%p495_p8)
}
  0xb8   : > { %357 = dma.vmem_to_hbm [thread:$0]  (%p625_p12), %s254_s23, 128, %s256_s24, %s241_s25  }
  0xb9 PF: > { %p374_p9 = scmp.ge.s32.totalorder %s541_s15, 2  ;;  %s267_s5 = sand.u32 1, %s529_s12  }
  0xba   : > { %s268_s11 = scalar_lea.sflag [#allocation4], %s267_s5 }
  0xbb   : > { %p368_p10 = pnand %p374_p9, %p630_p2 }
  0xbd   : > { %p369_p13 = pneg %p368_p10 }
  0xbf   : > { %524 = dma.done.wait (%p369_p13), %s268_s11, 128  }
  0xc0   : > { %526 = vsyncadd (%p369_p13), %s268_s11, 4294967168  ;;  %p17_p0 = scmp.ge.s32.totalorder %s605_s26, 5   ;;  %s712_s12 = smov %s533_s13 }
  0xc1   : > { %s713_s13 = smov %s537_s14  ;;  %s714_s14 = smov %s617_s29 }
  0xc2   : > { %s715_s15 = smov %s605_s26  ;;  %19 = sbr.rel (!%p17_p0) target bundleno = 6 (0x6), region = 81 }
  0xc7   :  { %274 = vsyncpa [#allocation3], 1 }
  0xc8   :  { %276 = vsyncpa [#allocation3 + $0x1], 1 }
  0xc9   :  { %277 = vsyncpa [#allocation6], 1 }
  0xca   :  { %278 = vsyncpa [#allocation4], 1 }
  0xcb   :  { %280 = vsyncpa [#allocation4 + $0x1], 1 }

</bundles_post_ra>
